<compile_context>
chip_gen: v7x
topology: tpu7x:2x2x1
jax: 0.10.0
libtpu: 0.0.40
codegen_flags: <defaults>
</compile_context>

<pallas_src>
import functools

import jax
import jax.numpy as jnp
from jax.experimental import pallas as pl
from jax.experimental.pallas import tpu as pltpu

NUM_CLASSES = 3
ALPHA = 0.25            # focal-loss alpha; gamma = 2 (two multiplies below)
SL1_BETA = 1.0 / 9.0    # smooth-L1 threshold
LANES = 128             # anchors packed per row (vreg lane width)


def _focal_loss_kernel(loc_p_ref, loc_t_ref, cls_p_ref, y_ref,
                       m_loc_ref, m_cls_ref, cls1_ref,
                       loc_out_ref, cnt_out_ref, cls_out_ref,
                       *, total_rows, tile_rows, tiles_per_slice):
    c = pl.program_id(0)          # anchor-range slice (v7x: one per TensorCore)
    i = pl.program_id(1)          # tile within the slice (accumulation axis)

    @pl.when(i == 0)
    def _():
        loc_out_ref[...] = jnp.zeros_like(loc_out_ref)
        cnt_out_ref[...] = jnp.zeros_like(cnt_out_ref)
        cls_out_ref[...] = jnp.zeros_like(cls_out_ref)

    # Row-validity mask: guards the partial final tile and the phantom (clamped)
    # tiles of the second slice when the tile count is odd.
    base_row = (c * tiles_per_slice + i) * tile_rows
    row = base_row + jax.lax.broadcasted_iota(jnp.int32, (tile_rows, 1), 0)
    row_ok = row < total_rows                                   # (T, 1) bool

    # Labels: one anchor per lane.
    y = y_ref[...]                                              # (T, 128) int32
    y_b = y.astype(jnp.float32).astype(jnp.bfloat16)            # exact for {-1..C}
    # Lane-expand labels onto the interleaved loc/cls layouts with tiny exact
    # bf16 matmuls (idle MXU) instead of an HBM repeat or cross-lane gather.
    y2 = jnp.dot(y_b, m_loc_ref[...], preferred_element_type=jnp.float32)  # (T, 2*128)
    y3 = jnp.dot(y_b, m_cls_ref[...], preferred_element_type=jnp.float32)  # (T, C*128)

    pos1 = jnp.logical_and(row_ok, y > 0)                       # per-anchor positives
    pos2 = jnp.logical_and(row_ok, y2 > 0.5)                    # positives, loc layout
    valid3 = jnp.logical_and(row_ok, y3 > -0.5)                 # non-ignored, cls layout

    # ---- smooth-L1 localization loss contributions (positives only) ----
    diff = jnp.abs(loc_t_ref[...].astype(jnp.float32)
                   - loc_p_ref[...].astype(jnp.float32))        # (T, 2*128)
    sl1 = jnp.where(diff <= SL1_BETA,
                    0.5 * 9.0 * diff * diff,
                    diff - 0.5 * SL1_BETA)
    loc_contrib = jnp.where(pos2, sl1, 0.0)

    # ---- focal loss contributions (non-ignored anchors only) ----
    x = cls_p_ref[...].astype(jnp.float32)                      # (T, C*128)
    t = (jnp.abs(y3 - cls1_ref[...]) < 0.5).astype(jnp.float32)  # one_hot(y,1+C)[:,1:]
    e = jnp.exp(-jnp.abs(x))                                    # shared transcendental
    inv = pl.reciprocal(1.0 + e, approx=True)                   # EUP, off the VALU path
    p = jnp.where(x >= 0.0, inv, e * inv)                       # sigmoid(x)
    pt = p * t + (1.0 - p) * (1.0 - t)
    w = ALPHA * t + (1.0 - ALPHA) * (1.0 - t)
    one_m_pt = 1.0 - pt
    w = w * one_m_pt * one_m_pt                                 # gamma = 2
    bce = jnp.maximum(x, 0.0) - x * t + jnp.log1p(e)            # stable BCE-with-logits
    cls_contrib = jnp.where(valid3, w * bce, 0.0)

    # ---- reduce over the sublane (row) axis, accumulate into small resident blocks ----
    loc_out_ref[...] += jnp.sum(loc_contrib, axis=0, keepdims=True)[None, :, :]
    cnt_out_ref[...] += jnp.sum(pos1.astype(jnp.float32), axis=0,
                                keepdims=True)[None, :, :]
    cls_out_ref[...] += jnp.sum(cls_contrib, axis=0, keepdims=True)[None, :, :]


def _round_up(x, m):
    return (x + m - 1) // m * m


def focal_loss_forward(loc_preds, loc_targets, cls_preds, cls_targets,
                       num_classes=NUM_CLASSES, tile_rows=256):
    """tile_rows=256 -> 32768 anchors / grid step (~1 MiB input slab)."""
    B, A, _ = loc_preds.shape
    C = num_classes
    N = B * A
    Np = max(_round_up(N, LANES), LANES)
    pad = Np - N

    loc_p = loc_preds.reshape(N, 2)
    loc_t = loc_targets.reshape(N, 2)
    cls_p = cls_preds.reshape(N, C)
    y = cls_targets.reshape(N).astype(jnp.int32)
    if pad:
        loc_p = jnp.pad(loc_p, ((0, pad), (0, 0)))
        loc_t = jnp.pad(loc_t, ((0, pad), (0, 0)))
        cls_p = jnp.pad(cls_p, ((0, pad), (0, 0)))
        y = jnp.pad(y, (0, pad), constant_values=-1)            # -1 = ignore

    total_rows = Np // LANES
    # Pack 128 anchors per row; coords/classes stay interleaved along the lanes.
    # These reshapes preserve row-major order -> no transpose / HBM shuffle.
    loc_p = loc_p.reshape(total_rows, 2 * LANES)
    loc_t = loc_t.reshape(total_rows, 2 * LANES)
    cls_p = cls_p.reshape(total_rows, C * LANES)
    y = y.reshape(total_rows, LANES)

    # Exact 0/1 lane-expansion matrices: column j of the interleaved layouts
    # belongs to in-row anchor j // R.  (Fetched once, resident in VMEM.)
    k = jnp.arange(LANES, dtype=jnp.int32)[:, None]
    m_loc = (jnp.arange(2 * LANES, dtype=jnp.int32)[None, :] // 2 == k
             ).astype(jnp.bfloat16)                              # (128, 2*128)
    m_cls = (jnp.arange(C * LANES, dtype=jnp.int32)[None, :] // C == k
             ).astype(jnp.bfloat16)                              # (128, C*128)
    # Per-lane (class index + 1) pattern for the one-hot targets.
    cls1 = (jnp.arange(C * LANES, dtype=jnp.int32) % C + 1
            ).astype(jnp.float32)[None, :]                       # (1, C*128)

    tile_rows = min(tile_rows, total_rows)
    if tile_rows < total_rows:
        tile_rows = max(8, (tile_rows // 8) * 8)
    tiles_total = pl.cdiv(total_rows, tile_rows)
    num_slices = 2 if tiles_total >= 2 else 1                    # v7x: one per TC
    tiles_per_slice = pl.cdiv(tiles_total, num_slices)

    def row_block(c, i):
        # Clamp phantom tiles of the last slice onto the last real block;
        # their contributions are masked to zero in-kernel via row_ok.
        return jnp.minimum(c * tiles_per_slice + i, tiles_total - 1)

    kernel = functools.partial(_focal_loss_kernel, total_rows=total_rows,
                               tile_rows=tile_rows,
                               tiles_per_slice=tiles_per_slice)
    out_loc, out_cnt, out_cls = pl.pallas_call(
        kernel,
        out_shape=(jax.ShapeDtypeStruct((num_slices, 1, 2 * LANES), jnp.float32),
                   jax.ShapeDtypeStruct((num_slices, 1, LANES), jnp.float32),
                   jax.ShapeDtypeStruct((num_slices, 1, C * LANES), jnp.float32)),
        grid_spec=pltpu.PrefetchScalarGridSpec(
            num_scalar_prefetch=0,
            grid=(num_slices, tiles_per_slice),
            in_specs=[
                pl.BlockSpec((tile_rows, 2 * LANES), lambda c, i: (row_block(c, i), 0)),
                pl.BlockSpec((tile_rows, 2 * LANES), lambda c, i: (row_block(c, i), 0)),
                pl.BlockSpec((tile_rows, C * LANES), lambda c, i: (row_block(c, i), 0)),
                pl.BlockSpec((tile_rows, LANES), lambda c, i: (row_block(c, i), 0)),
                pl.BlockSpec((LANES, 2 * LANES), lambda c, i: (0, 0)),
                pl.BlockSpec((LANES, C * LANES), lambda c, i: (0, 0)),
                pl.BlockSpec((1, C * LANES), lambda c, i: (0, 0)),
            ],
            out_specs=[
                pl.BlockSpec((1, 1, 2 * LANES), lambda c, i: (c, 0, 0)),
                pl.BlockSpec((1, 1, LANES), lambda c, i: (c, 0, 0)),
                pl.BlockSpec((1, 1, C * LANES), lambda c, i: (c, 0, 0)),
            ],
        ),
        compiler_params=pltpu.CompilerParams(
            dimension_semantics=("parallel", "arbitrary")),
    )(loc_p, loc_t, cls_p, y, m_loc, m_cls, cls1)

    loc_sum = jnp.sum(out_loc)
    num_pos = jnp.sum(out_cnt)
    cls_sum = jnp.sum(out_cls)

    # num_pos == 0 branch of the PyTorch forward: loc_loss = 0, divisor = 1
    loc_loss = jnp.where(num_pos > 0,
                         loc_sum / jnp.maximum(num_pos * 2.0, 1.0),
                         0.0)
    cls_loss = cls_sum / jnp.where(num_pos > 0, num_pos, 1.0)
    return loc_loss, cls_loss


def _reference_forward(loc_preds, loc_targets, cls_preds, cls_targets,
                       num_classes=NUM_CLASSES):
    """Pure-JAX reference mirroring the PyTorch module."""
    y = cls_targets.astype(jnp.int32)
    pos = (y > 0).astype(jnp.float32)[..., None]          # (B, A, 1)
    pos_neg = (y > -1).astype(jnp.float32)[..., None]     # (B, A, 1)
    num_pos = jnp.sum(pos)

    diff = jnp.abs(loc_targets - loc_preds)
    sl1 = jnp.where(diff <= 1.0 / 9.0, 0.5 * 9.0 * diff ** 2, diff - 0.5 / 9.0)
    loc_loss = jnp.where(num_pos > 0,
                         jnp.sum(sl1 * pos) / jnp.maximum(num_pos * 2.0, 1.0),
                         0.0)

    t = jax.nn.one_hot(y, 1 + num_classes)[..., 1:]
    x = cls_preds
    p = jax.nn.sigmoid(x)
    pt = p * t + (1 - p) * (1 - t)
    w = (ALPHA * t + (1 - ALPHA) * (1 - t)) * (1 - pt) ** 2
    bce = jnp.maximum(x, 0.0) - x * t + jnp.log1p(jnp.exp(-jnp.abs(x)))
    cls_loss = jnp.sum(w * bce * pos_neg) / jnp.where(num_pos > 0, num_pos, 1.0)
    return loc_loss, cls_loss


if __name__ == "__main__":
    key = jax.random.PRNGKey(0)
    B, A, C = 2, 1000, NUM_CLASSES            # N = 2000 anchors (exercises padding)
    k1, k2, k3, k4 = jax.random.split(key, 4)
    loc_preds = jax.random.normal(k1, (B, A, 2), jnp.float32)
    loc_targets = jax.random.normal(k2, (B, A, 2), jnp.float32)
    cls_preds = jax.random.normal(k3, (B, A, C), jnp.float32)
    # labels in {-1 (ignore), 0 (background), 1..C (foreground)}
    cls_targets = jax.random.randint(k4, (B, A), -1, C + 1, dtype=jnp.int32)

    loc_loss, cls_loss = focal_loss_forward(loc_preds, loc_targets,
                                            cls_preds, cls_targets)
    jax.block_until_ready((loc_loss, cls_loss))

    ref_loc, ref_cls = _reference_forward(loc_preds, loc_targets,
                                          cls_preds, cls_targets)
    # rtol widened slightly for the approx-reciprocal sigmoid (EUP fast path).
    assert jnp.allclose(loc_loss, ref_loc, rtol=1e-3, atol=1e-5), (loc_loss, ref_loc)
    assert jnp.allclose(cls_loss, ref_cls, rtol=1e-3, atol=1e-5), (cls_loss, ref_cls)

    print("KERNEL_OK")
</pallas_src>

<mosaic_0001>
module attributes {stable_mosaic.version = 11 : i64} {
  func.func @_focal_loss_kernel(%arg0: i32, %arg1: i32, %arg2: memref<16x256xf32, #tpu.memory_space<vmem>>, %arg3: memref<16x256xf32, #tpu.memory_space<vmem>>, %arg4: memref<16x384xf32, #tpu.memory_space<vmem>>, %arg5: memref<16x128xi32, #tpu.memory_space<vmem>>, %arg6: memref<128x256xbf16, #tpu.memory_space<vmem>>, %arg7: memref<128x384xbf16, #tpu.memory_space<vmem>>, %arg8: memref<1x384xf32, #tpu.memory_space<vmem>>, %arg9: memref<1x1x256xf32, #tpu.memory_space<vmem>>, %arg10: memref<1x1x128xf32, #tpu.memory_space<vmem>>, %arg11: memref<1x1x384xf32, #tpu.memory_space<vmem>>) attributes {dimension_semantics = [#tpu.dimension_semantics<parallel>, #tpu.dimension_semantics<arbitrary>], iteration_bounds = array<i64: 1, 1>, scalar_prefetch = 0 : i64, scratch_operands = 0 : i64, tpu.core_type = #tpu.core_type<tc>, window_params = [{transform_indices = @transform_0, window_bounds = array<i64: 16, 256>}, {transform_indices = @transform_1, window_bounds = array<i64: 16, 256>}, {transform_indices = @transform_2, window_bounds = array<i64: 16, 384>}, {transform_indices = @transform_3, window_bounds = array<i64: 16, 128>}, {pipeline_mode = #tpu.pipeline_mode<synchronous>, transform_indices = @transform_4, window_bounds = array<i64: 128, 256>}, {pipeline_mode = #tpu.pipeline_mode<synchronous>, transform_indices = @transform_5, window_bounds = array<i64: 128, 384>}, {pipeline_mode = #tpu.pipeline_mode<synchronous>, transform_indices = @transform_6, window_bounds = array<i64: 1, 384>}, {transform_indices = @transform_7, window_bounds = array<i64: 1, 1, 256>}, {transform_indices = @transform_8, window_bounds = array<i64: 1, 1, 128>}, {transform_indices = @transform_9, window_bounds = array<i64: 1, 1, 384>}]} {
    %c0_i32 = arith.constant 0 : i32
    %0 = arith.cmpi eq, %arg1, %c0_i32 : i32
    %1 = arith.extui %0 : i1 to i32
    %c0_i32_0 = arith.constant 0 : i32
    %2 = arith.cmpi ne, %1, %c0_i32_0 : i32
    scf.if %2 {
      %cst_56 = arith.constant 0.000000e+00 : f32
      %111 = vector.broadcast %cst_56 : f32 to vector<1x1x256xf32>
      %c0_57 = arith.constant 0 : index
      %c0_58 = arith.constant 0 : index
      %c0_59 = arith.constant 0 : index
      %112 = vector.load %arg9[%c0_57, %c0_58, %c0_59] : memref<1x1x256xf32, #tpu.memory_space<vmem>>, vector<1x1x256xf32>
      tpu.vector_store %arg9[%c0_57, %c0_58, %c0_59], %111 {strides = array<i32>} : memref<1x1x256xf32, #tpu.memory_space<vmem>>, vector<1x1x256xf32>,
      %cst_60 = arith.constant 0.000000e+00 : f32
      %113 = vector.broadcast %cst_60 : f32 to vector<1x1x128xf32>
      %c0_61 = arith.constant 0 : index
      %c0_62 = arith.constant 0 : index
      %c0_63 = arith.constant 0 : index
      %114 = vector.load %arg10[%c0_61, %c0_62, %c0_63] : memref<1x1x128xf32, #tpu.memory_space<vmem>>, vector<1x1x128xf32>
      tpu.vector_store %arg10[%c0_61, %c0_62, %c0_63], %113 {strides = array<i32>} : memref<1x1x128xf32, #tpu.memory_space<vmem>>, vector<1x1x128xf32>,
      %cst_64 = arith.constant 0.000000e+00 : f32
      %115 = vector.broadcast %cst_64 : f32 to vector<1x1x384xf32>
      %c0_65 = arith.constant 0 : index
      %c0_66 = arith.constant 0 : index
      %c0_67 = arith.constant 0 : index
      %116 = vector.load %arg11[%c0_65, %c0_66, %c0_67] : memref<1x1x384xf32, #tpu.memory_space<vmem>>, vector<1x1x384xf32>
      tpu.vector_store %arg11[%c0_65, %c0_66, %c0_67], %115 {strides = array<i32>} : memref<1x1x384xf32, #tpu.memory_space<vmem>>, vector<1x1x384xf32>,
    } else {
    }
    %c1_i32 = arith.constant 1 : i32
    %3 = arith.muli %arg0, %c1_i32 : i32
    %4 = arith.addi %3, %arg1 : i32
    %c16_i32 = arith.constant 16 : i32
    %5 = arith.muli %4, %c16_i32 : i32
    %6 = tpu.iota {dimensions = array<i32: 0>} : vector<16x1xi32>
    %7 = vector.broadcast %5 : i32 to vector<16x1xi32>
    %8 = arith.addi %7, %6 : vector<16x1xi32>
    %c16_i32_1 = arith.constant 16 : i32
    %9 = vector.broadcast %c16_i32_1 : i32 to vector<16x1xi32>
    %10 = arith.cmpi slt, %8, %9 : vector<16x1xi32>
    %c0 = arith.constant 0 : index
    %c0_2 = arith.constant 0 : index
    %11 = vector.load %arg5[%c0, %c0_2] : memref<16x128xi32, #tpu.memory_space<vmem>>, vector<16x128xi32>
    %12 = arith.sitofp %11 : vector<16x128xi32> to vector<16x128xf32>
    %13 = arith.truncf %12 : vector<16x128xf32> to vector<16x128xbf16>
    %c0_3 = arith.constant 0 : index
    %c0_4 = arith.constant 0 : index
    %14 = vector.load %arg6[%c0_3, %c0_4] : memref<128x256xbf16, #tpu.memory_space<vmem>>, vector<128x256xbf16>
    %cst = arith.constant dense<0.000000e+00> : vector<16x256xf32>
    %15 = tpu.matmul %13, %14, %cst {dimension_numbers = #tpu.dot_dimension_numbers<[1], [0], [0], [1], [0, 0, 1, 1], [], []>} : vector<16x128xbf16>, vector<128x256xbf16>, vector<16x256xf32> -> vector<16x256xf32>
    %c0_5 = arith.constant 0 : index
    %c0_6 = arith.constant 0 : index
    %16 = vector.load %arg7[%c0_5, %c0_6] : memref<128x384xbf16, #tpu.memory_space<vmem>>, vector<128x384xbf16>
    %cst_7 = arith.constant dense<0.000000e+00> : vector<16x384xf32>
    %17 = tpu.matmul %13, %16, %cst_7 {dimension_numbers = #tpu.dot_dimension_numbers<[1], [0], [0], [1], [0, 0, 1, 1], [], []>} : vector<16x128xbf16>, vector<128x384xbf16>, vector<16x384xf32> -> vector<16x384xf32>
    %c0_i32_8 = arith.constant 0 : i32
    %18 = vector.broadcast %c0_i32_8 : i32 to vector<16x128xi32>
    %19 = arith.cmpi sgt, %11, %18 : vector<16x128xi32>
    %20 = vector.broadcast %10 : vector<16x1xi1> to vector<16x128xi1>
    %21 = arith.andi %20, %19 : vector<16x128xi1>
    %cst_9 = arith.constant 5.000000e-01 : f32
    %22 = vector.broadcast %cst_9 : f32 to vector<16x256xf32>
    %23 = arith.cmpf ogt, %15, %22 : vector<16x256xf32>
    %24 = vector.broadcast %10 : vector<16x1xi1> to vector<16x256xi1>
    %25 = arith.andi %24, %23 : vector<16x256xi1>
    %cst_10 = arith.constant -5.000000e-01 : f32
    %26 = vector.broadcast %cst_10 : f32 to vector<16x384xf32>
    %27 = arith.cmpf ogt, %17, %26 : vector<16x384xf32>
    %28 = vector.broadcast %10 : vector<16x1xi1> to vector<16x384xi1>
    %29 = arith.andi %28, %27 : vector<16x384xi1>
    %c0_11 = arith.constant 0 : index
    %c0_12 = arith.constant 0 : index
    %30 = vector.load %arg3[%c0_11, %c0_12] : memref<16x256xf32, #tpu.memory_space<vmem>>, vector<16x256xf32>
    %c0_13 = arith.constant 0 : index
    %c0_14 = arith.constant 0 : index
    %31 = vector.load %arg2[%c0_13, %c0_14] : memref<16x256xf32, #tpu.memory_space<vmem>>, vector<16x256xf32>
    %32 = arith.subf %30, %31 : vector<16x256xf32>
    %33 = math.absf %32 : vector<16x256xf32>
    %cst_15 = arith.constant 0.111111112 : f32
    %34 = vector.broadcast %cst_15 : f32 to vector<16x256xf32>
    %35 = arith.cmpf ole, %33, %34 : vector<16x256xf32>
    %cst_16 = arith.constant 4.500000e+00 : f32
    %36 = vector.broadcast %cst_16 : f32 to vector<16x256xf32>
    %37 = arith.mulf %36, %33 : vector<16x256xf32>
    %38 = arith.mulf %37, %33 : vector<16x256xf32>
    %cst_17 = arith.constant 0.055555556 : f32
    %39 = vector.broadcast %cst_17 : f32 to vector<16x256xf32>
    %40 = arith.subf %33, %39 : vector<16x256xf32>
    %41 = arith.select %35, %38, %40 : vector<16x256xi1>, vector<16x256xf32>
    %cst_18 = arith.constant 0.000000e+00 : f32
    %42 = vector.broadcast %cst_18 : f32 to vector<16x256xf32>
    %43 = arith.select %25, %41, %42 : vector<16x256xi1>, vector<16x256xf32>
    %c0_19 = arith.constant 0 : index
    %c0_20 = arith.constant 0 : index
    %44 = vector.load %arg4[%c0_19, %c0_20] : memref<16x384xf32, #tpu.memory_space<vmem>>, vector<16x384xf32>
    %c0_21 = arith.constant 0 : index
    %c0_22 = arith.constant 0 : index
    %45 = vector.load %arg8[%c0_21, %c0_22] : memref<1x384xf32, #tpu.memory_space<vmem>>, vector<1x384xf32>
    %46 = vector.broadcast %45 : vector<1x384xf32> to vector<16x384xf32>
    %47 = arith.subf %17, %46 : vector<16x384xf32>
    %48 = math.absf %47 : vector<16x384xf32>
    %cst_23 = arith.constant 5.000000e-01 : f32
    %49 = vector.broadcast %cst_23 : f32 to vector<16x384xf32>
    %50 = arith.cmpf olt, %48, %49 : vector<16x384xf32>
    %51 = arith.extui %50 : vector<16x384xi1> to vector<16x384xi32>
    %52 = arith.sitofp %51 : vector<16x384xi32> to vector<16x384xf32>
    %53 = math.absf %44 : vector<16x384xf32>
    %cst_24 = arith.constant 0.000000e+00 : f32
    %54 = vector.broadcast %cst_24 : f32 to vector<16x384xf32>
    %55 = arith.subf %54, %53 : vector<16x384xf32>
    %56 = math.exp %55 : vector<16x384xf32>
    %cst_25 = arith.constant 1.000000e+00 : f32
    %57 = vector.broadcast %cst_25 : f32 to vector<16x384xf32>
    %58 = arith.addf %57, %56 : vector<16x384xf32>
    %59 = tpu.reciprocal %58 {approx = true} : vector<16x384xf32> -> vector<16x384xf32>
    %cst_26 = arith.constant 0.000000e+00 : f32
    %60 = vector.broadcast %cst_26 : f32 to vector<16x384xf32>
    %61 = arith.cmpf oge, %44, %60 : vector<16x384xf32>
    %62 = arith.mulf %56, %59 : vector<16x384xf32>
    %63 = arith.select %61, %59, %62 : vector<16x384xi1>, vector<16x384xf32>
    %64 = arith.mulf %63, %52 : vector<16x384xf32>
    %cst_27 = arith.constant 1.000000e+00 : f32
    %65 = vector.broadcast %cst_27 : f32 to vector<16x384xf32>
    %66 = arith.subf %65, %63 : vector<16x384xf32>
    %cst_28 = arith.constant 1.000000e+00 : f32
    %67 = vector.broadcast %cst_28 : f32 to vector<16x384xf32>
    %68 = arith.subf %67, %52 : vector<16x384xf32>
    %69 = arith.mulf %66, %68 : vector<16x384xf32>
    %70 = arith.addf %64, %69 : vector<16x384xf32>
    %cst_29 = arith.constant 2.500000e-01 : f32
    %71 = vector.broadcast %cst_29 : f32 to vector<16x384xf32>
    %72 = arith.mulf %71, %52 : vector<16x384xf32>
    %cst_30 = arith.constant 1.000000e+00 : f32
    %73 = vector.broadcast %cst_30 : f32 to vector<16x384xf32>
    %74 = arith.subf %73, %52 : vector<16x384xf32>
    %cst_31 = arith.constant 7.500000e-01 : f32
    %75 = vector.broadcast %cst_31 : f32 to vector<16x384xf32>
    %76 = arith.mulf %75, %74 : vector<16x384xf32>
    %77 = arith.addf %72, %76 : vector<16x384xf32>
    %cst_32 = arith.constant 1.000000e+00 : f32
    %78 = vector.broadcast %cst_32 : f32 to vector<16x384xf32>
    %79 = arith.subf %78, %70 : vector<16x384xf32>
    %80 = arith.mulf %77, %79 : vector<16x384xf32>
    %81 = arith.mulf %80, %79 : vector<16x384xf32>
    %cst_33 = arith.constant 0.000000e+00 : f32
    %82 = vector.broadcast %cst_33 : f32 to vector<16x384xf32>
    %83 = arith.maximumf %44, %82 : vector<16x384xf32>
    %84 = arith.mulf %44, %52 : vector<16x384xf32>
    %85 = arith.subf %83, %84 : vector<16x384xf32>
    %86 = math.log1p %56 : vector<16x384xf32>
    %87 = arith.addf %85, %86 : vector<16x384xf32>
    %88 = arith.mulf %81, %87 : vector<16x384xf32>
    %cst_34 = arith.constant 0.000000e+00 : f32
    %89 = vector.broadcast %cst_34 : f32 to vector<16x384xf32>
    %90 = arith.select %29, %88, %89 : vector<16x384xi1>, vector<16x384xf32>
    %c0_35 = arith.constant 0 : index
    %c0_36 = arith.constant 0 : index
    %c0_37 = arith.constant 0 : index
    %91 = vector.load %arg9[%c0_35, %c0_36, %c0_37] : memref<1x1x256xf32, #tpu.memory_space<vmem>>, vector<1x1x256xf32>
    %cst_38 = arith.constant dense<0.000000e+00> : vector<256xf32>
    %92 = vector.multi_reduction <add>, %43, %cst_38 [0] : vector<16x256xf32> to vector<256xf32>
    %93 = vector.shape_cast %92 : vector<256xf32> to vector<1x256xf32>
    %94 = vector.shape_cast %93 : vector<1x256xf32> to vector<1x1x256xf32>
    %95 = arith.addf %91, %94 : vector<1x1x256xf32>
    %c0_39 = arith.constant 0 : index
    %c0_40 = arith.constant 0 : index
    %c0_41 = arith.constant 0 : index
    %96 = vector.load %arg9[%c0_39, %c0_40, %c0_41] : memref<1x1x256xf32, #tpu.memory_space<vmem>>, vector<1x1x256xf32>
    tpu.vector_store %arg9[%c0_39, %c0_40, %c0_41], %95 {strides = array<i32>} : memref<1x1x256xf32, #tpu.memory_space<vmem>>, vector<1x1x256xf32>,
    %c0_42 = arith.constant 0 : index
    %c0_43 = arith.constant 0 : index
    %c0_44 = arith.constant 0 : index
    %97 = vector.load %arg10[%c0_42, %c0_43, %c0_44] : memref<1x1x128xf32, #tpu.memory_space<vmem>>, vector<1x1x128xf32>
    %98 = arith.extui %21 : vector<16x128xi1> to vector<16x128xi32>
    %99 = arith.sitofp %98 : vector<16x128xi32> to vector<16x128xf32>
    %cst_45 = arith.constant dense<0.000000e+00> : vector<128xf32>
    %100 = vector.multi_reduction <add>, %99, %cst_45 [0] : vector<16x128xf32> to vector<128xf32>
    %101 = vector.shape_cast %100 : vector<128xf32> to vector<1x128xf32>
    %102 = vector.shape_cast %101 : vector<1x128xf32> to vector<1x1x128xf32>
    %103 = arith.addf %97, %102 : vector<1x1x128xf32>
    %c0_46 = arith.constant 0 : index
    %c0_47 = arith.constant 0 : index
    %c0_48 = arith.constant 0 : index
    %104 = vector.load %arg10[%c0_46, %c0_47, %c0_48] : memref<1x1x128xf32, #tpu.memory_space<vmem>>, vector<1x1x128xf32>
    tpu.vector_store %arg10[%c0_46, %c0_47, %c0_48], %103 {strides = array<i32>} : memref<1x1x128xf32, #tpu.memory_space<vmem>>, vector<1x1x128xf32>,
    %c0_49 = arith.constant 0 : index
    %c0_50 = arith.constant 0 : index
    %c0_51 = arith.constant 0 : index
    %105 = vector.load %arg11[%c0_49, %c0_50, %c0_51] : memref<1x1x384xf32, #tpu.memory_space<vmem>>, vector<1x1x384xf32>
    %cst_52 = arith.constant dense<0.000000e+00> : vector<384xf32>
    %106 = vector.multi_reduction <add>, %90, %cst_52 [0] : vector<16x384xf32> to vector<384xf32>
    %107 = vector.shape_cast %106 : vector<384xf32> to vector<1x384xf32>
    %108 = vector.shape_cast %107 : vector<1x384xf32> to vector<1x1x384xf32>
    %109 = arith.addf %105, %108 : vector<1x1x384xf32>
    %c0_53 = arith.constant 0 : index
    %c0_54 = arith.constant 0 : index
    %c0_55 = arith.constant 0 : index
    %110 = vector.load %arg11[%c0_53, %c0_54, %c0_55] : memref<1x1x384xf32, #tpu.memory_space<vmem>>, vector<1x1x384xf32>
    tpu.vector_store %arg11[%c0_53, %c0_54, %c0_55], %109 {strides = array<i32>} : memref<1x1x384xf32, #tpu.memory_space<vmem>>, vector<1x1x384xf32>,
    return
  }
  func.func @transform_0(%arg0: i32, %arg1: i32) -> (i32, i32) {
    %c1_i32 = arith.constant 1 : i32
    %0 = arith.muli %arg0, %c1_i32 : i32
    %1 = arith.addi %0, %arg1 : i32
    %c0_i32 = arith.constant 0 : i32
    %2 = arith.minsi %1, %c0_i32 : i32
    %c0_i32_0 = arith.constant 0 : i32
    %c0_i32_1 = arith.constant 0 : i32
    return %2, %c0_i32_0 : i32, i32
  }
  func.func @transform_1(%arg0: i32, %arg1: i32) -> (i32, i32) {
    %c1_i32 = arith.constant 1 : i32
    %0 = arith.muli %arg0, %c1_i32 : i32
    %1 = arith.addi %0, %arg1 : i32
    %c0_i32 = arith.constant 0 : i32
    %2 = arith.minsi %1, %c0_i32 : i32
    %c0_i32_0 = arith.constant 0 : i32
    %c0_i32_1 = arith.constant 0 : i32
    return %2, %c0_i32_0 : i32, i32
  }
  func.func @transform_2(%arg0: i32, %arg1: i32) -> (i32, i32) {
    %c1_i32 = arith.constant 1 : i32
    %0 = arith.muli %arg0, %c1_i32 : i32
    %1 = arith.addi %0, %arg1 : i32
    %c0_i32 = arith.constant 0 : i32
    %2 = arith.minsi %1, %c0_i32 : i32
    %c0_i32_0 = arith.constant 0 : i32
    %c0_i32_1 = arith.constant 0 : i32
    return %2, %c0_i32_0 : i32, i32
  }
  func.func @transform_3(%arg0: i32, %arg1: i32) -> (i32, i32) {
    %c1_i32 = arith.constant 1 : i32
    %0 = arith.muli %arg0, %c1_i32 : i32
    %1 = arith.addi %0, %arg1 : i32
    %c0_i32 = arith.constant 0 : i32
    %2 = arith.minsi %1, %c0_i32 : i32
    %c0_i32_0 = arith.constant 0 : i32
    %c0_i32_1 = arith.constant 0 : i32
    return %2, %c0_i32_0 : i32, i32
  }
  func.func @transform_4(%arg0: i32, %arg1: i32) -> (i32, i32) {
    %c0_i32 = arith.constant 0 : i32
    %c0_i32_0 = arith.constant 0 : i32
    %c0_i32_1 = arith.constant 0 : i32
    return %c0_i32, %c0_i32_0 : i32, i32
  }
  func.func @transform_5(%arg0: i32, %arg1: i32) -> (i32, i32) {
    %c0_i32 = arith.constant 0 : i32
    %c0_i32_0 = arith.constant 0 : i32
    %c0_i32_1 = arith.constant 0 : i32
    return %c0_i32, %c0_i32_0 : i32, i32
  }
  func.func @transform_6(%arg0: i32, %arg1: i32) -> (i32, i32) {
    %c0_i32 = arith.constant 0 : i32
    %c0_i32_0 = arith.constant 0 : i32
    %c0_i32_1 = arith.constant 0 : i32
    return %c0_i32, %c0_i32_0 : i32, i32
  }
  func.func @transform_7(%arg0: i32, %arg1: i32) -> (i32, i32, i32) {
    %c0_i32 = arith.constant 0 : i32
    %c0_i32_0 = arith.constant 0 : i32
    %c0_i32_1 = arith.constant 0 : i32
    return %arg0, %c0_i32, %c0_i32_0 : i32, i32, i32
  }
  func.func @transform_8(%arg0: i32, %arg1: i32) -> (i32, i32, i32) {
    %c0_i32 = arith.constant 0 : i32
    %c0_i32_0 = arith.constant 0 : i32
    %c0_i32_1 = arith.constant 0 : i32
    return %arg0, %c0_i32, %c0_i32_0 : i32, i32, i32
  }
  func.func @transform_9(%arg0: i32, %arg1: i32) -> (i32, i32, i32) {
    %c0_i32 = arith.constant 0 : i32
    %c0_i32_0 = arith.constant 0 : i32
    %c0_i32_1 = arith.constant 0 : i32
    return %arg0, %c0_i32, %c0_i32_0 : i32, i32, i32
  }
}

</mosaic_0001>

<bundles_post_ra>
// kernel: tpu_custom_call.1
= control target key start
LH: loop header
LB: loop body
LE: loop exit
PB: predicated region body
PF: predicated region fallthrough
CT: control target
= control target key end

     0   :  { %15 = vsyncpa [#allocation3], 0  ;;  %s1978_s0 = inlined_call_operand.hbm [shape: f32[16,256], index: 0, kind: input, shape index: {}]   ;;  %s1979_s1 = inlined_call_operand.hbm [shape: f32[16,256], index: 1, kind: input, shape index: {}]   ;;  %s1980_s2 = inlined_call_operand.hbm [shape: f32[16,384], index: 2, kind: input, shape index: {}]   ;;  %s1981_s3 = inlined_call_operand.hbm [shape: s32[16,128], index: 3, kind: input, shape index: {}]   ;;  %s1982_s4 = inlined_call_operand.hbm [shape: bf16[128,256], index: 4, kind: input, shape index: {}]   ;;  %s1983_s5 = inlined_call_operand.hbm [shape: bf16[128,384], index: 5, kind: input, shape index: {}]   ;;  %s1984_s6 = inlined_call_operand.vmem [shape: f32[1,384], index: 6, kind: input, shape index: {}]   ;;  %s1985_s7 = inlined_call_operand.hbm [shape: f32[1,1,256], index: 7, kind: output, shape index: {0}]   ;;  %s1986_s8 = inlined_call_operand.hbm [shape: f32[1,1,128], index: 8, kind: output, shape index: {1}]   ;;  %s1987_s9 = inlined_call_operand.hbm [shape: f32[1,1,384], index: 9, kind: output, shape index: {2}]  }
   0x1   :  { %16 = vsyncpa [#allocation6], 0 }
   0x2   :  { %17 = vsyncpa [#allocation9], 0 }
   0x3   :  { %18 = vsyncpa [#allocation12], 0 }
   0x4   :  { %19 = vsyncpa [#allocation4], 0 }
   0x5   :  { %20 = vsyncpa [#allocation15], 0  ;;  %s1462_s30 = smov [#allocation5]   ;;  %s1463_s11 = smov [#allocation8]  }
   0x6   :  { %s52_s10 = sshll.u32 %s1462_s30, 4  ;;  %s89_s12 = sshll.u32 %s1463_s11, 4  ;;  %s53_s10 = int_to_ptr.vmem [resolvable:$true] %s52_s10  ;;  %s1533_s12 = int_to_ptr.vmem [resolvable:$true] %s89_s12 }
   0x7   :  { %s1252_s15 = scalar_lea.hbm %s1979_s1, 512 }
   0x8   :  { %p1253_p0 = scmp.ne.s32.totalorder %s1979_s1, %s1252_s15  ;;  %p1256_p1 = scmp.lt.u32.totalorder %s1252_s15, %s1979_s1 }
   0xa   :  { %p1258_p2 = pnand %p1256_p1, %p1253_p0 }
   0xc   :  { %1261 = shalt.err (!%p1258_p2)
}
   0xd   :  { %s1262_s20 = scalar_lea.vmem %s53_s10, 512  ;;  %p1267_p4 = scmp.lt.s32.totalorder %s53_s10, %s53_s10 }
   0xe   :  { %p1263_p3 = scmp.ne.s32.totalorder %s53_s10, %s1262_s20  ;;  %p1268_p5 = scmp.lt.s32.totalorder %s1262_s20, %s1262_s20 }
  0x10   :  { %p1269_p6 = por %p1268_p5, %p1267_p4 }
  0x12   :  { %p1270_p7 = pnand %p1269_p6, %p1263_p3 }
  0x14   :  { %1273 = shalt.err (!%p1270_p7)
}
  0x15   :  { %s1464_s21 = smov 256   ;;  %s1465_s22 = smov 16  }
  0x16   :  { %58 = dma.hbm_to_vmem [thread:$0]  %s1979_s1, 512, %s53_s10, [#allocation6], %s1464_s21, %s1464_s21, %s1465_s22  }
  0x17   :  { %s1274_s27 = scalar_lea.hbm %s1981_s3, 256 }
  0x18   :  { %p1275_p8 = scmp.ne.s32.totalorder %s1981_s3, %s1274_s27  ;;  %p1278_p9 = scmp.lt.u32.totalorder %s1274_s27, %s1981_s3 }
  0x1a   :  { %p1280_p10 = pnand %p1278_p9, %p1275_p8 }
  0x1c   :  { %1283 = shalt.err (!%p1280_p10)
}
  0x1d   :  { %s1284_s13 = scalar_lea.vmem %s1533_s12, 256  ;;  %p1289_p12 = scmp.lt.s32.totalorder %s1533_s12, %s1533_s12 }
  0x1e   :  { %p1285_p11 = scmp.ne.s32.totalorder %s1533_s12, %s1284_s13  ;;  %p1290_p13 = scmp.lt.s32.totalorder %s1284_s13, %s1284_s13 }
  0x20   :  { %p1291_p0 = por %p1290_p13, %p1289_p12 }
  0x22   :  { %p1292_p1 = pnand %p1291_p0, %p1285_p11 }
  0x24   :  { %1295 = shalt.err (!%p1292_p1)
}
  0x25   :  { %s1466_s1 = smov 128   ;;  %s1467_s10 = smov 8  }
  0x26   :  { %95 = dma.hbm_to_vmem [thread:$0]  %s1981_s3, 256, %s1533_s12, [#allocation9], %s1466_s1, %s1466_s1, %s1467_s10  }
  0x27   :  { %s1468_s16 = smov [#allocation2]   ;;  %s1469_s18 = smov [#allocation7]  }
  0x28   :  { %s33_s17 = sshll.u32 %s1468_s16, 4  ;;  %s71_s19 = sshll.u32 %s1469_s18, 4  ;;  %s34_s17 = int_to_ptr.vmem [resolvable:$true] %s33_s17  ;;  %s1570_s19 = int_to_ptr.vmem [resolvable:$true] %s71_s19 }
  0x29   :  { %s1296_s24 = scalar_lea.hbm %s1978_s0, 512 }
  0x2a   :  { %p1297_p2 = scmp.ne.s32.totalorder %s1978_s0, %s1296_s24  ;;  %p1300_p3 = scmp.lt.u32.totalorder %s1296_s24, %s1978_s0 }
  0x2c   :  { %p1302_p4 = pnand %p1300_p3, %p1297_p2 }
  0x2e   :  { %1305 = shalt.err (!%p1302_p4)
}
  0x2f   :  { %s1306_s3 = scalar_lea.vmem %s34_s17, 512  ;;  %p1311_p6 = scmp.lt.s32.totalorder %s34_s17, %s34_s17 }
  0x30   :  { %p1307_p5 = scmp.ne.s32.totalorder %s34_s17, %s1306_s3  ;;  %p1312_p7 = scmp.lt.s32.totalorder %s1306_s3, %s1306_s3 }
  0x32   :  { %p1313_p8 = por %p1312_p7, %p1311_p6 }
  0x34   :  { %p1314_p9 = pnand %p1313_p8, %p1307_p5 }
  0x36   :  { %1317 = shalt.err (!%p1314_p9)
}
  0x37   :  { %39 = dma.hbm_to_vmem [thread:$0]  %s1978_s0, 512, %s34_s17, [#allocation3], %s1464_s21, %s1464_s21, %s1465_s22  }
  0x38   :  { %s1318_s13 = scalar_lea.hbm %s1980_s2, 768 }
  0x39   :  { %p1319_p10 = scmp.ne.s32.totalorder %s1980_s2, %s1318_s13  ;;  %p1322_p11 = scmp.lt.u32.totalorder %s1318_s13, %s1980_s2 }
  0x3b   :  { %p1324_p12 = pnand %p1322_p11, %p1319_p10 }
  0x3d   :  { %1327 = shalt.err (!%p1324_p12)
}
  0x3e   :  { %s1328_s20 = scalar_lea.vmem %s1570_s19, 768  ;;  %p1333_p0 = scmp.lt.s32.totalorder %s1570_s19, %s1570_s19 }
  0x3f   :  { %p1329_p13 = scmp.ne.s32.totalorder %s1570_s19, %s1328_s20  ;;  %p1334_p1 = scmp.lt.s32.totalorder %s1328_s20, %s1328_s20 }
  0x41   :  { %p1335_p2 = por %p1334_p1, %p1333_p0 }
  0x43   :  { %p1336_p3 = pnand %p1335_p2, %p1329_p13 }
  0x45   :  { %1339 = shalt.err (!%p1336_p3)
}
  0x46   :  { %s1470_s0 = smov 384   ;;  %s1471_s21 = smov 24  }
  0x47   :  { %77 = dma.hbm_to_vmem [thread:$0]  %s1980_s2, 768, %s1570_s19, [#allocation6], %s1470_s0, %s1470_s0, %s1471_s21  }
  0x48   :  { %s1472_s23 = smov [#allocation10]   ;;  %s1473_s25 = smov [#allocation11]  }
  0x49   :  { %s101_s24 = sshll.u32 %s1472_s23, 4  ;;  %s113_s26 = sshll.u32 %s1473_s25, 4  ;;  %s102_s24 = int_to_ptr.vmem [resolvable:$true] %s101_s24  ;;  %s1604_s26 = int_to_ptr.vmem [resolvable:$true] %s113_s26 }
  0x4a   :  { %s1340_s3 = scalar_lea.hbm %s1982_s4, 2048 }
  0x4b   :  { %p1341_p4 = scmp.ne.s32.totalorder %s1982_s4, %s1340_s3  ;;  %p1344_p5 = scmp.lt.u32.totalorder %s1340_s3, %s1982_s4 }
  0x4d   :  { %p1346_p6 = pnand %p1344_p5, %p1341_p4 }
  0x4f   :  { %1349 = shalt.err (!%p1346_p6)
}
  0x50   :  { %s1350_s2 = scalar_lea.vmem %s102_s24, 2048  ;;  %p1355_p8 = scmp.lt.s32.totalorder %s102_s24, %s102_s24 }
  0x51   :  { %p1351_p7 = scmp.ne.s32.totalorder %s102_s24, %s1350_s2  ;;  %p1356_p9 = scmp.lt.s32.totalorder %s1350_s2, %s1350_s2 }
  0x53   :  { %p1357_p10 = por %p1356_p9, %p1355_p8 }
  0x55   :  { %p1358_p11 = pnand %p1357_p10, %p1351_p7 }
  0x57   :  { %1361 = shalt.err (!%p1358_p11)
}
  0x58   :  { %107 = dma.hbm_to_vmem [thread:$0]  %s1982_s4, 2048, %s102_s24, [#allocation9], %s1466_s1, %s1466_s1, %s1467_s10  }
  0x59   :  { %s1362_s16 = scalar_lea.hbm %s1983_s5, 3072 }
  0x5a   :  { %p1363_p12 = scmp.ne.s32.totalorder %s1983_s5, %s1362_s16  ;;  %p1366_p13 = scmp.lt.u32.totalorder %s1362_s16, %s1983_s5 }
  0x5c   :  { %p1368_p0 = pnand %p1366_p13, %p1363_p12 }
  0x5e   :  { %1371 = shalt.err (!%p1368_p0)
}
  0x5f   :  { %s1372_s22 = scalar_lea.vmem %s1604_s26, 3072  ;;  %p1377_p2 = scmp.lt.s32.totalorder %s1604_s26, %s1604_s26 }
  0x60   :  { %p1373_p1 = scmp.ne.s32.totalorder %s1604_s26, %s1372_s22  ;;  %p1378_p3 = scmp.lt.s32.totalorder %s1372_s22, %s1372_s22 }
  0x62   :  { %p1379_p4 = por %p1378_p3, %p1377_p2 }
  0x64   :  { %p1380_p5 = pnand %p1379_p4, %p1373_p1 }
  0x66   :  { %1383 = shalt.err (!%p1380_p5)
}
  0x67   :  { %s1474_s4 = smov 192   ;;  %s1475_s1 = smov 12  }
  0x68   :  { %119 = dma.hbm_to_vmem [thread:$0]  %s1983_s5, 3072, %s1604_s26, [#allocation12], %s1474_s4, %s1474_s4, %s1475_s1  }
  0x69   :  { %1450 = dma.done.wait [#allocation3], 512  }
  0x6a   :  { %1451 = vsyncadd [#allocation3], 4294966784 }
  0x6b   :  { %1452 = dma.done.wait [#allocation6], 1280  }
  0x6c   :  { %1453 = vsyncadd [#allocation6], 4294966016 }
  0x6d   :  { %1454 = dma.done.wait [#allocation9], 2304  }
  0x6e   :  { %1455 = vsyncadd [#allocation9], 4294964992 }
  0x6f   :  { %1456 = dma.done.wait [#allocation12], 3072  }
  0x70   :  { %1457 = vsyncadd [#allocation12], 4294964224  ;;  %v1476_v0 = vmov 0   ;;  %v1477_v1 = vmov 0.0   ;;  %v1160_v2 = vld [vmem:[#allocation10 + $0x4] ss:$8 sps:$4 sm:$0xff]   ;;  %v161_v50 = vlaneseq }
  0x71   :  { %313 = vmatprep.mubr.bf16.mxu0 %v1476_v0  ;;  %166 = vst [vmem:[#allocation14] sm:$0x1] %v1477_v1  ;;  %516 = vmatprep.mubr.bf16.mxu1 %v1476_v0  ;;  %v1162_v3 = vld [vmem:[#allocation10] ss:$8 sps:$4 sm:$0xff]   ;;  %v1163_v4 = vld [vmem:[#allocation11 + $0x4] ss:$12 sps:$4 sm:$0xff]  }
  0x72   :  { %281 = vmatprep.subr.bf16.mxu0 %v1160_v2  ;;  %v1165_v5 = vld [vmem:[#allocation11] ss:$12 sps:$4 sm:$0xff]   ;;  %v1166_v6 = vld [vmem:[#allocation10 + $0x14] ss:$8 sps:$4 sm:$0xff]   ;;  %v1168_v7 = vld [vmem:[#allocation10 + $0x10] ss:$8 sps:$4 sm:$0xff]   ;;  %484 = vmatprep.subr.bf16.mxu1 %v1163_v4 }
  0x73   :  { %282 = vmatpush1.bf16.msra.mxu0 %v1162_v3  ;;  %v1169_v8 = vld [vmem:[#allocation11 + $0x1c] ss:$12 sps:$4 sm:$0xff]   ;;  %485 = vmatpush1.bf16.msra.mxu1 %v1165_v5  ;;  %v1171_v9 = vld [vmem:[#allocation11 + $0x18] ss:$12 sps:$4 sm:$0xff]   ;;  %v1175_v12 = vld [vmem:[#allocation11 + $0x34] ss:$12 sps:$4 sm:$0xff]  }
  0x74   :  { %283 = vmatprep.subr.bf16.mxu0 %v1166_v6  ;;  %486 = vmatprep.subr.bf16.mxu1 %v1169_v8  ;;  %v1172_v10 = vld [vmem:[#allocation10 + $0x24] ss:$8 sps:$4 sm:$0xff]   ;;  %v1174_v11 = vld [vmem:[#allocation10 + $0x20] ss:$8 sps:$4 sm:$0xff]   ;;  %v1178_v13 = vld [vmem:[#allocation10 + $0x34] ss:$8 sps:$4 sm:$0xff]  }
  0x75   :  { %v1177_v14 = vld [vmem:[#allocation11 + $0x30] ss:$12 sps:$4 sm:$0xff]   ;;  %v1181_v15 = vld [vmem:[#allocation11 + $0x4c] ss:$12 sps:$4 sm:$0xff]   ;;  %v1183_v18 = vld [vmem:[#allocation11 + $0x48] ss:$12 sps:$4 sm:$0xff]  }
  0x76   :  { %v1180_v16 = vld [vmem:[#allocation10 + $0x30] ss:$8 sps:$4 sm:$0xff]   ;;  %v1184_v17 = vld [vmem:[#allocation10 + $0x44] ss:$8 sps:$4 sm:$0xff]   ;;  %v1186_v20 = vld [vmem:[#allocation10 + $0x40] ss:$8 sps:$4 sm:$0xff]  }
  0x77   :  { %284 = vmatpush1.bf16.msra.mxu0 %v1168_v7  ;;  %487 = vmatpush1.bf16.msra.mxu1 %v1171_v9  ;;  %v1187_v19 = vld [vmem:[#allocation11 + $0x64] ss:$12 sps:$4 sm:$0xff]   ;;  %v1190_v21 = vld [vmem:[#allocation10 + $0x54] ss:$8 sps:$4 sm:$0xff]   ;;  %v1189_v22 = vld [vmem:[#allocation11 + $0x60] ss:$12 sps:$4 sm:$0xff]  }
  0x78   :  { %285 = vmatprep.subr.bf16.mxu0 %v1172_v10  ;;  %488 = vmatprep.subr.bf16.mxu1 %v1175_v12  ;;  %v1193_v23 = vld [vmem:[#allocation11 + $0x7c] ss:$12 sps:$4 sm:$0xff]   ;;  %v1192_v24 = vld [vmem:[#allocation10 + $0x50] ss:$8 sps:$4 sm:$0xff]   ;;  %v1196_v26 = vld [vmem:[#allocation10 + $0x64] ss:$8 sps:$4 sm:$0xff]  }
  0x79   :  { %v1195_v25 = vld [vmem:[#allocation11 + $0x78] ss:$12 sps:$4 sm:$0xff]   ;;  %v1199_v27 = vld [vmem:[#allocation11 + $0x94] ss:$12 sps:$4 sm:$0xff]   ;;  %v1201_v35 = vld [vmem:[#allocation11 + $0x90] ss:$12 sps:$4 sm:$0xff]  }
  0x7a   :  { %v180_v28 = vld [vmem:[#allocation8] sm:$0xff]  ;;  %v181_v29 = vld [vmem:[#allocation8 + $0x8] sm:$0xff]  ;;  %v1198_v30 = vld [vmem:[#allocation10 + $0x60] ss:$8 sps:$4 sm:$0xff]   ;;  %vm1478_vm2 = vmmov 0   ;;  %vm1651_vm3 = vcmp.lt.s32.totalorder %v161_v50, 256 }
  0x7b   :  { %286 = vmatpush1.bf16.msra.mxu0 %v1174_v11  ;;  %489 = vmatpush1.bf16.msra.mxu1 %v1177_v14  ;;  %vm568_vm0 = vcmp.gt.s32.totalorder %v180_v28, 0  ;;  %vm569_vm1 = vcmp.gt.s32.totalorder %v181_v29, 0  ;;  %v1202_v33 = vld [vmem:[#allocation10 + $0x74] ss:$8 sps:$4 sm:$0xff]   ;;  %v1205_v36 = vld [vmem:[#allocation11 + $0xac] ss:$12 sps:$4 sm:$0xff]   ;;  %v182_v37 = vcvt.s32.f32 %v180_v28  ;;  %v183_v38 = vcvt.s32.f32 %v181_v29 }
  0x7c   :  { %287 = vmatprep.subr.bf16.mxu0 %v1178_v13  ;;  %490 = vmatprep.subr.bf16.mxu1 %v1181_v15  ;;  %v1108_v31 = vsel %vm568_vm0, 1.0, %v1477_v1  ;;  %v1109_v32 = vsel %vm569_vm1, 1.0, %v1477_v1  ;;  %v1204_v39 = vld [vmem:[#allocation10 + $0x70] ss:$8 sps:$4 sm:$0xff]   ;;  %v1207_v40 = vld [vmem:[#allocation11 + $0xa8] ss:$12 sps:$4 sm:$0xff]  }
  0x7d   :  { %v943_v34 = vadd.f32 %v1109_v32, %v1108_v31  ;;  %v184_v41 = vpack.c.bf16 %v183_v38, %v182_v37  ;;  %v1208_v42 = vld [vmem:[#allocation11 + $0x8] ss:$12 sps:$4 sm:$0xff]   ;;  %v1209_v43 = vld [vmem:[#allocation11 + $0x20] ss:$12 sps:$4 sm:$0xff]   ;;  %v1210_v44 = vld [vmem:[#allocation11 + $0x38] ss:$12 sps:$4 sm:$0xff]  }
  0x7e   :  { %v1211_v45 = vld [vmem:[#allocation11 + $0x50] ss:$12 sps:$4 sm:$0xff]   ;;  %v1212_v46 = vld [vmem:[#allocation11 + $0x68] ss:$12 sps:$4 sm:$0xff]   ;;  %v1213_v47 = vld [vmem:[#allocation11 + $0x80] ss:$12 sps:$4 sm:$0xff]  }
  0x7f   :  { %288 = vmatpush1.bf16.msra.mxu0 %v1180_v16  ;;  %491 = vmatpush1.bf16.msra.mxu1 %v1183_v18  ;;  %v1214_v48 = vld [vmem:[#allocation11 + $0x98] ss:$12 sps:$4 sm:$0xff]   ;;  %v1215_v49 = vld [vmem:[#allocation11 + $0xb0] ss:$12 sps:$4 sm:$0xff]   ;;  %165 = vst.msk [vmem:[#allocation13] sm:$0x3] %vm1651_vm3, %v1477_v1 }
  0x80   :  { %289 = vmatprep.subr.bf16.mxu0 %v1184_v17  ;;  %492 = vmatprep.subr.bf16.mxu1 %v1187_v19  ;;  %v944_v52 = vrot.slane %v943_v34, 4  ;;  %v1658_v54 = vld [vmem:[#allocation7] sm:$0xff]  ;;  %v1660_v55 = vld [vmem:[#allocation7 + $0x8] sm:$0xff]  ;;  %vm1663_vm4 = vcmp.lt.s32.totalorder %v161_v50, 384  ;;  %v1667_v58 = vld [vmem:[#allocation7 + $0x18] sm:$0xff]  ;;  %s1479_s5 = smov [#allocation14]  }
  0x81   :  { %169 = vst.msk [vmem:[#allocation16] sm:$0x7] %vm1663_vm4, %v1477_v1  ;;  %v689_v59 = vand.u32 2147483647, %v1658_v54  ;;  %v690_v61 = vand.u32 2147483647, %v1660_v55 }
  0x82   :  { %v945_v53 = vadd.f32 %v944_v52, %v943_v34  ;;  %v692_v62 = vand.u32 2147483647, %v1667_v58  ;;  %v1675_v0 = vld [vmem:[#allocation7 + $0x20] sm:$0xff]  ;;  %s1021_s23 = sshll.u32 %s1479_s5, 4  ;;  %s1022_s23 = int_to_ptr.vmem [resolvable:$true] %s1021_s23 }
  0x83   :  { %290 = vmatpush1.bf16.msra.mxu0 %v1186_v20  ;;  %493 = vmatpush1.bf16.msra.mxu1 %v1189_v22  ;;  %v938_v2 = vld [vmem:[#allocation14] sm:$0x1]  ;;  %v695_v3 = vsub.f32 0.0, %v689_v59  ;;  %v696_v5 = vsub.f32 0.0, %v690_v61  ;;  %v693_v7 = vand.u32 2147483647, %v1675_v0  ;;  %p1389_p7 = scmp.lt.s32.totalorder %s1022_s23, %s1022_s23 }
  0x84   :  { %291 = vmatprep.subr.bf16.mxu0 %v1190_v21  ;;  %494 = vmatprep.subr.bf16.mxu1 %v1193_v23  ;;  %v946_v56 = vrot.slane %v945_v53, 2  ;;  %v698_v6 = vsub.f32 0.0, %v692_v62  ;;  %s1384_s24 = scalar_lea.vmem %s1022_s23, 16  ;;  %s1388_s25 = scalar_lea.vmem %s1022_s23, 32 }
  0x85   :  { %v701_v9 = vmul.f32 1.442695, %v695_v3  ;;  %v703_v10 = vmul.f32 1.442695, %v696_v5  ;;  %p1385_p6 = scmp.ne.s32.totalorder %s1022_s23, %s1384_s24  ;;  %p1390_p8 = scmp.lt.s32.totalorder %s1388_s25, %s1384_s24 }
  0x86   :  { %v947_v60 = vadd.f32 %v946_v56, %v945_v53 }
  0x87   :  { %292 = vmatpush1.bf16.msra.mxu0 %v1192_v24  ;;  %495 = vmatpush1.bf16.msra.mxu1 %v1195_v25  ;;  %p1391_p9 = por %p1390_p8, %p1389_p7 }
  0x88   :  { %293 = vmatprep.subr.bf16.mxu0 %v1196_v26  ;;  %496 = vmatprep.subr.bf16.mxu1 %v1199_v27  ;;  %v948_v63 = vrot.slane %v947_v60, 1 }
  0x89   :  { %p1392_p10 = pnand %p1391_p9, %p1385_p6 }
  0x8a   :  { %v949_v4 = vadd.f32 %v948_v63, %v947_v60 }
  0x8b   :  { %294 = vmatpush1.bf16.msra.mxu0 %v1198_v30  ;;  %497 = vmatpush1.bf16.msra.mxu1 %v1201_v35 }
  0x8c   :  { %295 = vmatprep.subr.bf16.mxu0 %v1202_v33  ;;  %498 = vmatprep.subr.bf16.mxu1 %v1205_v36  ;;  %v950_v8 = vadd.f32 %v949_v4, %v938_v2 }
  0x8e   :  { %951 = vst [vmem:[#allocation14] sm:$0x1] %v950_v8 }
  0x8f   :  { %296 = vmatpush1.bf16.msra.mxu0 %v1204_v39  ;;  %499 = vmatpush1.bf16.msra.mxu1 %v1207_v40 }
  0x90   :  { %1119 = vmatprep.subr.bf16.mxu0 %v1477_v1 }
  0x92   :  { %314 = vmatmul.mubr.bf16.vlgmr.msra.gmra.mrb[0].mxu0 %v184_v41  ;;  %517 = vmatmul.mubr.bf16.vlgmr.msra.gmra.mrb[0].mxu1 %v184_v41 }
  0x93   :  { %1120 = vmatpush3.bf16.msra.mxu0 %v1208_v42  ;;  %1135 = vmatprep.mubr.msk.bf16.mxu0 %vm1478_vm2, %v1477_v1 }
  0x94   :  { %1121 = vmatprep.subr.bf16.mxu0 %v1477_v1 }
  0x97   :  { %1122 = vmatpush3.bf16.msra.mxu0 %v1209_v43 }
  0x98   :  { %1123 = vmatprep.subr.bf16.mxu0 %v1477_v1 }
  0x9b   :  { %1124 = vmatpush3.bf16.msra.mxu0 %v1210_v44 }
  0x9c   :  { %1125 = vmatprep.subr.bf16.mxu0 %v1477_v1 }
  0x9f   :  { %1126 = vmatpush3.bf16.msra.mxu0 %v1211_v45 }
  0xa0   :  { %1127 = vmatprep.subr.bf16.mxu0 %v1477_v1 }
  0xa3   :  { %1128 = vmatpush3.bf16.msra.mxu0 %v1212_v46 }
  0xa4   :  { %1129 = vmatprep.subr.bf16.mxu0 %v1477_v1 }
  0xa7   :  { %1130 = vmatpush3.bf16.msra.mxu0 %v1213_v47 }
  0xa8   :  { %1131 = vmatprep.subr.bf16.mxu0 %v1477_v1 }
  0xab   :  { %1132 = vmatpush3.bf16.msra.mxu0 %v1214_v48 }
  0xac   :  { %1133 = vmatprep.subr.bf16.mxu0 %v1477_v1 }
  0xaf   :  { %1134 = vmatpush3.bf16.msra.mxu0 %v1215_v49 }
  0xb2   :  { %1136 = vmatmul.mubr.bf16.vlgmr.msra.gmra.mrb[4].mxu0 %v184_v41 }
  0xb3   :  { %1395 = shalt.err (!%p1392_p10)
}
  0xb4   :  { %s1396_s28 = scalar_lea.hbm %s1986_s8, 16 }
  0xb5   :  { %p1397_p11 = scmp.ne.s32.totalorder %s1986_s8, %s1396_s28  ;;  %p1400_p12 = scmp.lt.u32.totalorder %s1396_s28, %s1986_s8 }
  0xb7   :  { %p1402_p13 = pnand %p1400_p12, %p1397_p11 }
  0xb9   :  { %1405 = shalt.err (!%p1402_p13)
}
  0xba   :  { %1024 = dma.vmem_to_hbm [thread:$0]  %s1022_s23, 16, %s1986_s8, [#allocation15]   ;;  %v707_v11 = vmul.f32 1.442695, %v698_v6  ;;  %v699_v12 = vsub.f32 0.0, %v693_v7  ;;  %1216 = vpow2.f32 %v701_v9  ;;  %v596_v14 = vld [vmem:[#allocation5] sm:$0xff] }
  0xbb   :  { %1218 = vpow2.f32 %v703_v10  ;;  %v600_v15 = vld [vmem:[#allocation2] sm:$0xff]  ;;  %v597_v16 = vld [vmem:[#allocation5 + $0x8] sm:$0xff]  ;;  %v598_v21 = vld [vmem:[#allocation5 + $0x10] sm:$0xff]  ;;  %v1703_v39 = vshrl.u32 %v161_v50, 7  ;;  %vm725_vm9 = vcmp.ge.f32.partialorder %v1658_v54, 0.0  ;;  %vm726_vm10 = vcmp.ge.f32.partialorder %v1660_v55, 0.0 }
  0xbc   :  { %1220 = vpow2.f32 %v707_v11  ;;  %v709_v13 = vmul.f32 1.442695, %v699_v12  ;;  %v601_v17 = vld [vmem:[#allocation2 + $0x8] sm:$0xff]  ;;  %v604_v20 = vsub.f32 %v596_v14, %v600_v15  ;;  %v602_v22 = vld [vmem:[#allocation2 + $0x10] sm:$0xff]  ;;  %v599_v28 = vld [vmem:[#allocation5 + $0x18] sm:$0xff]  ;;  %vm728_vm11 = vcmp.ge.f32.partialorder %v1667_v58, 0.0 }
  0xbd   :  { %v605_v24 = vsub.f32 %v597_v16, %v601_v17  ;;  %v606_v26 = vsub.f32 %v598_v21, %v602_v22  ;;  %v603_v29 = vld [vmem:[#allocation2 + $0x18] sm:$0xff]  ;;  %v1705_v42 = vld [vmem:[#allocation7 + $0x10] sm:$0xff]  ;;  %v1707_v45 = vld [vmem:[#allocation7 + $0x28] sm:$0xff]  ;;  %v646_v48 = vsub.s32 0, %v1703_v39  ;;  %v650_v3 = vsub.s32 1, %v1703_v39 }
  0xbe   :  { %1222 = vpow2.f32 %v709_v13  ;;  %v608_v30 = vand.u32 2147483647, %v604_v20  ;;  %v607_v34 = vsub.f32 %v599_v28, %v603_v29  ;;  %v1713_v49 = vld [vmem:[%s1984_s6] sm:$0x7]  ;;  %v691_v52 = vand.u32 2147483647, %v1705_v42 }
  0xbf   :  { %v609_v33 = vand.u32 2147483647, %v605_v24  ;;  %v610_v35 = vand.u32 2147483647, %v606_v26  ;;  %v694_v53 = vand.u32 2147483647, %v1707_v45  ;;  %v1722_v2 = vrot.slane %v1713_v49, %v646_v48 }
  0xc0   :  { %v616_v36 = vmul.f32 4.5, %v608_v30  ;;  %v611_v40 = vand.u32 2147483647, %v607_v34  ;;  %vm612_vm5 = vcmp.le.f32.partialorder %v608_v30, 0.11111111  ;;  %v697_v8 = vsub.f32 0.0, %v691_v52 }
  0xc1   :  { %v617_v38 = vmul.f32 4.5, %v609_v33  ;;  %v618_v41 = vmul.f32 4.5, %v610_v35  ;;  %v1098_v44 = vadd.f32 -0.055555556, %v608_v30  ;;  %vm613_vm6 = vcmp.le.f32.partialorder %v609_v33, 0.11111111 }
  0xc2   :  { %v620_v43 = vmul.f32 %v616_v36, %v608_v30  ;;  %v1099_v47 = vadd.f32 -0.055555556, %v609_v33  ;;  %v619_v50 = vmul.f32 4.5, %v611_v40  ;;  %v1100_v61 = vadd.f32 -0.055555556, %v610_v35  ;;  %s1481_s6 = smov [#allocation13]  }
  0xc3   :  { %v621_v46 = vmul.f32 %v617_v38, %v609_v33  ;;  %v622_v60 = vmul.f32 %v618_v41, %v610_v35  ;;  %vm614_vm7 = vcmp.le.f32.partialorder %v610_v35, 0.11111111  ;;  %v1101_v7 = vadd.f32 -0.055555556, %v611_v40  ;;  %s1011_s13 = sshll.u32 %s1481_s6, 4  ;;  %s1012_s13 = int_to_ptr.vmem [resolvable:$true] %s1011_s13 }
  0xc4   :  { %v1690_v18 = vpop.eup %1216  ;;  %v1717_v59 = vsel %vm612_vm5, %v620_v43, %v1098_v44  ;;  %v623_v6 = vmul.f32 %v619_v50, %v611_v40  ;;  %vm615_vm8 = vcmp.le.f32.partialorder %v611_v40, 0.11111111  ;;  %v700_v11 = vsub.f32 0.0, %v694_v53  ;;  %s1406_s14 = scalar_lea.vmem %s1012_s13, 32  ;;  %p1411_p1 = scmp.lt.s32.totalorder %s1012_s13, %s1012_s13 }
  0xc5   :  { %v1692_v19 = vpop.eup %1218  ;;  %v713_v25 = vadd.f32 1.0, %v1690_v18  ;;  %v1719_v63 = vsel %vm613_vm6, %v621_v46, %v1099_v47  ;;  %v830_v5 = vmul.f32 -0.5, %v1690_v18  ;;  %v1729_v12 = vsel %vm614_vm7, %v622_v60, %v1100_v61  ;;  %p1407_p0 = scmp.ne.s32.totalorder %s1012_s13, %s1406_s14  ;;  %p1412_p2 = scmp.lt.s32.totalorder %s1406_s14, %s1406_s14 }
  0xc6   :  { %v1694_v23 = vpop.eup %1220  ;;  %v714_v27 = vadd.f32 1.0, %v1692_v19  ;;  %v839_v10 = vmul.f32 -0.5, %v1692_v19  ;;  %v1733_v15 = vrot.slane %v1713_v49, %v650_v3  ;;  %v1738_v22 = vsel %vm615_vm8, %v623_v6, %v1101_v7 }
  0xc7   :  { %v716_v31 = vadd.f32 1.0, %v1694_v23  ;;  %1224 = vrcp.f32 %v713_v25  ;;  %v857_v17 = vmul.f32 -0.5, %v1694_v23  ;;  %v831_v21 = vadd.f32 1.0, %v830_v5  ;;  %p1413_p3 = por %p1412_p2, %p1411_p1 }
  0xc8   :  { %v1699_v32 = vpop.eup %1222  ;;  %1226 = vrcp.f32 %v714_v27  ;;  %v705_v24 = vmul.f32 1.442695, %v697_v8  ;;  %v1480_v26 = vmov 1966171168   ;;  %v840_v28 = vadd.f32 1.0, %v839_v10 }
  0xc9   :  { %1228 = vrcp.f32 %v716_v31  ;;  %v717_v37 = vadd.f32 1.0, %v1699_v32  ;;  %v711_v29 = vmul.f32 1.442695, %v700_v11  ;;  %v842_v34 = vand.u32 2147483647, %v1692_v19  ;;  %p1414_p4 = pnand %p1413_p3, %p1407_p0 }
  0xca   :  { %1230 = vlog2.f32 %v713_v25  ;;  %v858_v38 = vadd.f32 1.0, %v857_v17  ;;  %v1753_v43 = vmul.f32 %v1690_v18, %v831_v21  ;;  %v860_v44 = vand.u32 2147483647, %v1694_v23 }
  0xcb   :  { %1232 = vrcp.f32 %v717_v37  ;;  %vm729_vm12 = vcmp.ge.f32.partialorder %v1675_v0, 0.0  ;;  %vm1768_vm14 = vcmp.lt.f32.partialorder %v842_v34, 0.0004427343  ;;  %v866_v60 = vmul.f32 -0.5, %v1699_v32 }
  0xcc   :  { %1234 = vlog2.f32 %v714_v27  ;;  %v918_v27 = vunpack.c.l.s4 %v1480_v26  ;;  %vm1783_vm15 = vcmp.lt.f32.partialorder %v860_v44, 0.0004427343 }
  0xcd   :  { %1236 = vlog2.f32 %v716_v31  ;;  %v833_v31 = vand.u32 2147483647, %v1690_v18  ;;  %v867_v21 = vadd.f32 1.0, %v866_v60  ;;  %v869_v60 = vand.u32 2147483647, %v1699_v32 }
  0xce   :  { %1238 = vlog2.f32 %v717_v37  ;;  %v919_v46 = vunpack.c.0.s8 %v918_v27  ;;  %v1760_v37 = vmul.f32 %v1692_v19, %v840_v28 }
  0xcf   :  { %1240 = vpow2.f32 %v705_v24  ;;  %vm1763_vm13 = vcmp.lt.f32.partialorder %v833_v31, 0.0004427343  ;;  %vm1846_vm8 = vcmp.lt.f32.partialorder %v869_v60, 0.0004427343 }
  0xd0   :  { %1242 = vpow2.f32 %v711_v29  ;;  %v1792_v7 = vsub.s32 %v919_v46, %v1703_v39  ;;  %v899_v29 = vld [vmem:[#allocation13] sm:$0x3] }
  0xd1   :  { %v1225_v56 = vpop.eup %1224 }
  0xd2   :  { %v1227_v62 = vpop.eup %1226  ;;  %v731_v9 = vmul.f32 %v1225_v56, %v1690_v18 }
  0xd3   :  { %v1229_v4 = vpop.eup %1228  ;;  %v732_v13 = vmul.f32 %v1227_v62, %v1692_v19 }
  0xd4   :  { %v1231_v14 = vpop.eup %1230  ;;  %v734_v16 = vmul.f32 %v1229_v4, %v1694_v23  ;;  %v1741_v25 = vsel %vm725_vm9, %v1225_v56, %v731_v9  ;;  %v1775_v56 = vmul.f32 %v1694_v23, %v858_v38 }
  0xd5   :  { %v1233_v20 = vpop.eup %1232  ;;  %v1744_v33 = vsel %vm726_vm10, %v1227_v62, %v732_v13  ;;  %v1747_v35 = vmul.f32 0.6931472, %v1231_v14  ;;  %v749_v48 = vsub.f32 1.0, %v1741_v25  ;;  %v809_v62 = vmax.f32 %v1658_v54, 0.0 }
  0xd6   :  { %v1235_v30 = vpop.eup %1234  ;;  %v1749_v36 = vsel %vm728_vm11, %v1229_v4, %v734_v16  ;;  %v735_v40 = vmul.f32 %v1233_v20, %v1699_v32  ;;  %v750_v18 = vsub.f32 1.0, %v1744_v33 }
  0xd7   :  { %v1237_v41 = vpop.eup %1236  ;;  %v1757_v47 = vmul.f32 0.6931472, %v1235_v30  ;;  %v752_v4 = vsub.f32 1.0, %v1749_v36 }
  0xd8   :  { %v1772_v53 = vmul.f32 0.6931472, %v1237_v41  ;;  %v1777_v19 = vsel %vm729_vm12, %v1233_v20, %v735_v40  ;;  %v1239_v24 = vpop.eup %1238 }
  0xd9   :  { %v1822_v41 = vpop.eup %1240 }
 0x165   :  { %v315_v61 = vpop.f32.mrb[0].mxu0  ;;  %v1799_v10 = vpop.f32.mrb[0].mxu1 }
 0x166   :  { %vm576_vm0 = vcmp.gt.f32.partialorder %v315_v61, 0.5  ;;  %v317_v6 = vpop.f32.mrb[1].mxu0  ;;  %v659_v16 = vsub.f32 %v1799_v10, %v1722_v2  ;;  %v1805_v17 = vpop.f32.mrb[1].mxu1  ;;  %vm584_vm11 = vcmp.gt.f32.partialorder %v1799_v10, -0.5 }
 0x167   :  { %v632_v9 = vsel %vm576_vm0, %v1717_v59, 0.0  ;;  %vm577_vm1 = vcmp.gt.f32.partialorder %v317_v6, 0.5  ;;  %v319_v11 = vpop.f32.mrb[2].mxu0  ;;  %v660_v27 = vsub.f32 %v1805_v17, %v1733_v15  ;;  %v1814_v28 = vpop.f32.mrb[2].mxu1 }
 0x168   :  { %vm578_vm2 = vcmp.gt.f32.partialorder %v319_v11, 0.5  ;;  %v321_v20 = vpop.f32.mrb[3].mxu0  ;;  %v633_v30 = vsel %vm577_vm1, %v1719_v63, 0.0  ;;  %v665_v31 = vand.u32 2147483647, %v659_v16  ;;  %v1820_v40 = vpop.f32.mrb[3].mxu1  ;;  %v662_v46 = vsub.f32 %v1814_v28, %v1722_v2 }
 0x169   :  { %v634_v26 = vsel %vm578_vm2, %v1729_v12, 0.0  ;;  %vm579_vm5 = vcmp.gt.f32.partialorder %v321_v20, 0.5  ;;  %v666_v12 = vand.u32 2147483647, %v660_v27  ;;  %v1827_v61 = vpop.eup %1242  ;;  %v1829_v63 = vmul.f32 0.6931472, %v1239_v24 }
 0x16a   :  { %v900_v34 = vadd.f32 %v634_v26, %v632_v9  ;;  %v635_v38 = vsel %vm579_vm5, %v1738_v22, 0.0  ;;  %vm671_vm6 = vcmp.lt.f32.partialorder %v665_v31, 0.5  ;;  %v1832_v9 = vmul.f32 %v1699_v32, %v867_v21 }
 0x16b   :  { %v907_v44 = vadd.f32 %v635_v38, %v633_v30  ;;  %v1102_v22 = vsel %vm671_vm6, 1.0, %v1477_v1  ;;  %vm672_vm7 = vcmp.lt.f32.partialorder %v666_v12, 0.5  ;;  %v668_v16 = vand.u32 2147483647, %v662_v46 }
 0x16c   :  { %v901_v6 = vrot.slane %v900_v34, 4  ;;  %v743_v20 = vmul.f32 %v1102_v22, %v1741_v25  ;;  %v755_v26 = vsub.f32 1.0, %v1102_v22  ;;  %v773_v2 = vmul.f32 0.25, %v1102_v22 }
 0x16d   :  { %v908_v11 = vrot.slane %v907_v44, 4  ;;  %v715_v27 = vadd.f32 1.0, %v1822_v41  ;;  %v1103_v31 = vsel %vm672_vm7, 1.0, %v1477_v1  ;;  %v1839_v24 = vadd.f32 1.0, %v1827_v61 }
 0x16e   :  { %v902_v30 = vadd.f32 %v901_v6, %v900_v34  ;;  %v761_v32 = vmul.f32 %v755_v26, %v749_v48  ;;  %v779_v21 = vmul.f32 0.75, %v755_v26  ;;  %v815_v12 = vmul.f32 %v1102_v22, %v1658_v54 }
 0x16f   :  { %v909_v38 = vadd.f32 %v908_v11, %v907_v44  ;;  %v663_v46 = vsub.f32 %v1820_v40, %v1733_v15  ;;  %v744_v6 = vmul.f32 %v1103_v31, %v1744_v33  ;;  %v756_v44 = vsub.f32 1.0, %v1103_v31 }
 0x170   :  { %v903_v34 = vrot.slane %v902_v30, 2  ;;  %vm674_vm9 = vcmp.lt.f32.partialorder %v668_v16, 0.5  ;;  %v767_v11 = vadd.f32 %v761_v32, %v743_v20  ;;  %v785_v8 = vadd.f32 %v779_v21, %v773_v2 }
 0x171   :  { %v910_v14 = vrot.slane %v909_v38, 2  ;;  %1244 = vrcp.f32 %v715_v27  ;;  %v762_v48 = vmul.f32 %v756_v44, %v750_v18  ;;  %v774_v22 = vmul.f32 0.25, %v1103_v31 }
 0x172   :  { %v904_v25 = vadd.f32 %v903_v34, %v902_v30  ;;  %v780_v26 = vmul.f32 0.75, %v756_v44  ;;  %v791_v15 = vsub.f32 1.0, %v767_v11  ;;  %v821_v60 = vsub.f32 %v809_v62, %v815_v12 }
 0x173   :  { %v911_v59 = vadd.f32 %v910_v14, %v909_v38  ;;  %v1105_v3 = vsel %vm674_vm9, 1.0, %v1477_v1  ;;  %v768_v23 = vadd.f32 %v762_v48, %v744_v6  ;;  %v816_v16 = vmul.f32 %v1103_v31, %v1660_v55 }
 0x174   :  { %v905_v13 = vrot.slane %v904_v25, 1  ;;  %v669_v20 = vand.u32 2147483647, %v663_v46  ;;  %v797_v2 = vmul.f32 %v791_v15, %v785_v8  ;;  %v746_v30 = vmul.f32 %v1105_v3, %v1749_v36 }
 0x175   :  { %v912_v32 = vrot.slane %v911_v59, 1  ;;  %v758_v33 = vsub.f32 1.0, %v1105_v3  ;;  %v786_v21 = vadd.f32 %v780_v26, %v774_v22  ;;  %v776_v34 = vmul.f32 0.25, %v1105_v3 }
 0x176   :  { %v906_v18 = vadd.f32 %v905_v13, %v904_v25  ;;  %v818_v44 = vmul.f32 %v1105_v3, %v1667_v58  ;;  %v792_v54 = vsub.f32 1.0, %v768_v23  ;;  %v803_v12 = vmul.f32 %v797_v2, %v791_v15 }
 0x177   :  { %v913_v62 = vadd.f32 %v912_v32, %v911_v59  ;;  %v764_v14 = vmul.f32 %v758_v33, %v752_v4  ;;  %v782_v38 = vmul.f32 0.75, %v758_v33  ;;  %v2000_v8 = vsel %vm1763_vm13, %v1753_v43, %v1747_v35 }
 0x178   :  { %v881_v31 = vadd.f32 %v2000_v8, %v821_v60  ;;  %vm675_vm10 = vcmp.lt.f32.partialorder %v669_v20, 0.5  ;;  %1246 = vrcp.f32 %v1839_v24  ;;  %v2001_v3 = vmax.f32 %v1667_v58, 0.0 }
 0x179   :  { %v916_v13 = vcombine.low %v906_v18, %v913_v62  ;;  %v770_v46 = vadd.f32 %v764_v14, %v746_v30  ;;  %v788_v6 = vadd.f32 %v782_v38, %v776_v34  ;;  %v1106_v36 = vsel %vm675_vm10, 1.0, %v1477_v1 }
 0x17a   :  { %v824_v23 = vsub.f32 %v2001_v3, %v818_v44  ;;  %v871_v50 = vsel %vm1846_vm8, %v1832_v9, %v1829_v63  ;;  %v654_v4 = vsub.s32 2, %v1703_v39  ;;  %1248 = vlog2.f32 %v715_v27 }
 0x17b   :  { %v1875_v35 = vpop.eup %1244  ;;  %v798_v43 = vmul.f32 %v792_v54, %v786_v21  ;;  %v2002_v59 = vmax.f32 %v1660_v55, 0.0  ;;  %v923_v25 = vrot.slane %v916_v13, %v1792_v7  ;;  %v794_v58 = vsub.f32 1.0, %v770_v46 }
 0x17c   :  { %v747_v48 = vmul.f32 %v1106_v36, %v1777_v19  ;;  %v759_v22 = vsub.f32 1.0, %v1106_v36  ;;  %v777_v26 = vmul.f32 0.25, %v1106_v36  ;;  %v819_v15 = vmul.f32 %v1106_v36, %v1675_v0 }
 0x17d   :  { %v822_v11 = vsub.f32 %v2002_v59, %v816_v16  ;;  %v887_v39 = vmul.f32 %v881_v31, %v803_v12  ;;  %v800_v63 = vmul.f32 %v794_v58, %v788_v6  ;;  %v2003_v55 = vsel %vm1783_vm15, %v1775_v56, %v1772_v53 }
 0x17e   :  { %v884_v9 = vadd.f32 %v2003_v55, %v824_v23  ;;  %v930_v27 = vrot.slane %v923_v25, %v1792_v7  ;;  %v2004_v60 = vsub.f32 1.0, %v1777_v19  ;;  %v783_v20 = vmul.f32 0.75, %v759_v22 }
 0x17f   :  { %v848_v2 = vmul.f32 -0.5, %v1822_v41  ;;  %v2005_v32 = vsel %vm1768_vm14, %v1760_v37, %v1757_v47  ;;  %vm587_vm12 = vcmp.gt.f32.partialorder %v1814_v28, -0.5  ;;  %v806_v53 = vmul.f32 %v800_v63, %v794_v58 }
 0x180   :  { %v765_v16 = vmul.f32 %v759_v22, %v2004_v60  ;;  %v882_v5 = vadd.f32 %v2005_v32, %v822_v11  ;;  %v932_v56 = vadd.f32 %v930_v27, %v899_v29  ;;  %v804_v30 = vmul.f32 %v798_v43, %v792_v54 }
 0x181   :  { %v789_v10 = vadd.f32 %v783_v20, %v777_v26  ;;  %v2006_v19 = vmax.f32 %v1675_v0, 0.0  ;;  %v893_v21 = vsel %vm584_vm11, %v887_v39, 0.0  ;;  %v890_v34 = vmul.f32 %v884_v9, %v806_v53 }
 0x182   :  { %v771_v33 = vadd.f32 %v765_v16, %v747_v48  ;;  %v655_v44 = vrot.slane %v1713_v49, %v654_v4  ;;  %1250 = vlog2.f32 %v1839_v24  ;;  %937 = vst.msk [vmem:[#allocation13] sm:$0x3] %vm1651_vm3, %v932_v56  ;;  %v1247_v47 = vpop.eup %1246  ;;  %vm727_vm13 = vcmp.ge.f32.partialorder %v1705_v42, 0.0 }
 0x183   :  { %v825_v18 = vsub.f32 %v2006_v19, %v819_v15  ;;  %v733_v52 = vmul.f32 %v1875_v35, %v1822_v41 }
 0x184   :  { %v795_v37 = vsub.f32 1.0, %v771_v33 }
 0x185   :  { %1417 = shalt.err (!%p1414_p4)
}
 0x186   :  { %s1418_s18 = scalar_lea.hbm %s1985_s7, 32 }
 0x187   :  { %p1419_p5 = scmp.ne.s32.totalorder %s1985_s7, %s1418_s18  ;;  %p1422_p6 = scmp.lt.u32.totalorder %s1418_s18, %s1985_s7 }
 0x189   :  { %p1424_p7 = pnand %p1422_p6, %p1419_p5 }
 0x18b   :  { %1427 = shalt.err (!%p1424_p7)
}
 0x18c   :  { %1014 = dma.vmem_to_hbm [thread:$0]  %s1012_s13, 32, %s1985_s7, [#allocation4]   ;;  %v896_v51 = vsel %vm587_vm12, %v890_v34, 0.0  ;;  %v811_v0 = vmax.f32 %v1705_v42, 0.0  ;;  %v849_v49 = vadd.f32 1.0, %v848_v2  ;;  %v875_v24 = vmul.f32 -0.5, %v1827_v61  ;;  %v1249_v54 = vpop.eup %1248 }
 0x18d   :  { %v888_v62 = vmul.f32 %v882_v5, %v804_v30  ;;  %v953_v14 = vadd.f32 %v896_v51, %v893_v21  ;;  %v801_v38 = vmul.f32 %v795_v37, %v789_v10  ;;  %v885_v12 = vadd.f32 %v871_v50, %v825_v18  ;;  %v1923_v8 = vpop.f32.mrb[4].mxu0  ;;  %s1482_s7 = smov [#allocation16]  }
 0x18e   :  { %vm585_vm3 = vcmp.gt.f32.partialorder %v1805_v17, -0.5  ;;  %v661_v31 = vsub.f32 %v1923_v8, %v655_v44  ;;  %v851_v13 = vand.u32 2147483647, %v1822_v41  ;;  %v1137_v28 = vpop.f32.mrb[5].mxu0  ;;  %v736_v46 = vmul.f32 %v1247_v47, %v1827_v61  ;;  %s1031_s10 = sshll.u32 %s1482_s7, 4  ;;  %s1032_s10 = int_to_ptr.vmem [resolvable:$true] %s1031_s10 }
 0x18f   :  { %v954_v6 = vrot.slane %v953_v14, 4  ;;  %v807_v3 = vmul.f32 %v801_v38, %v795_v37  ;;  %v739_v23 = vsel %vm727_vm13, %v1875_v35, %v733_v52  ;;  %v1932_v36 = vpop.f32.mrb[6].mxu0  ;;  %vm730_vm14 = vcmp.ge.f32.partialorder %v1707_v45, 0.0  ;;  %s1428_s17 = scalar_lea.vmem %s1032_s10, 48  ;;  %s1432_s5 = scalar_lea.vmem %s1032_s10, 64 }
 0x190   :  { %vm588_vm15 = vcmp.gt.f32.partialorder %v1820_v40, -0.5  ;;  %v667_v17 = vand.u32 2147483647, %v661_v31  ;;  %v847_v50 = vmul.f32 0.6931472, %v1249_v54  ;;  %v664_v4 = vsub.f32 %v1932_v36, %v655_v44  ;;  %v1138_v43 = vpop.f32.mrb[7].mxu0  ;;  %v1251_v40 = vpop.eup %1250  ;;  %p1429_p8 = scmp.ne.s32.totalorder %s1032_s10, %s1428_s17  ;;  %p1433_p9 = scmp.lt.s32.totalorder %s1032_s10, %s1032_s10 }
 0x191   :  { %v894_v59 = vsel %vm585_vm3, %v888_v62, 0.0  ;;  %v955_v11 = vadd.f32 %v954_v6, %v953_v14  ;;  %v891_v25 = vmul.f32 %v885_v12, %v807_v3  ;;  %v850_v58 = vmul.f32 %v1822_v41, %v849_v49  ;;  %p1434_p10 = scmp.lt.s32.totalorder %s1432_s5, %s1428_s17 }
 0x192   :  { %vm673_vm0 = vcmp.lt.f32.partialorder %v667_v17, 0.5  ;;  %v751_v48 = vsub.f32 1.0, %v739_v23  ;;  %v670_v22 = vand.u32 2147483647, %v664_v4  ;;  %v742_v35 = vsel %vm730_vm14, %v1247_v47, %v736_v46 }
 0x193   :  { %v956_v26 = vrot.slane %v955_v11, 2  ;;  %v897_v15 = vsel %vm588_vm15, %v891_v25, 0.0  ;;  %v1104_v29 = vsel %vm673_vm0, 1.0, %v1477_v1  ;;  %v876_v39 = vadd.f32 1.0, %v875_v24  ;;  %p1435_p11 = por %p1434_p10, %p1433_p9 }
 0x194   :  { %v960_v63 = vadd.f32 %v897_v15, %v894_v59  ;;  %v757_v55 = vsub.f32 1.0, %v1104_v29  ;;  %vm1939_vm1 = vcmp.lt.f32.partialorder %v851_v13, 0.0004427343  ;;  %v814_v27 = vmax.f32 %v1707_v45, 0.0 }
 0x195   :  { %v957_v60 = vadd.f32 %v956_v26, %v955_v11  ;;  %v745_v41 = vmul.f32 %v1104_v29, %v739_v23  ;;  %vm676_vm2 = vcmp.lt.f32.partialorder %v670_v22, 0.5  ;;  %v754_v16 = vsub.f32 1.0, %v742_v35  ;;  %p1436_p12 = pnand %p1435_p11, %p1429_p8 }
 0x196   :  { %v961_v20 = vrot.slane %v960_v63, 4  ;;  %v763_v2 = vmul.f32 %v757_v55, %v751_v48  ;;  %v781_v32 = vmul.f32 0.75, %v757_v55  ;;  %v1107_v5 = vsel %vm676_vm2, 1.0, %v1477_v1  ;;  %v952_v55 = vld [vmem:[#allocation16] sm:$0x7] }
 0x197   :  { %v817_v53 = vmul.f32 %v1104_v29, %v1705_v42  ;;  %v760_v56 = vsub.f32 1.0, %v1107_v5  ;;  %v874_v30 = vmul.f32 0.6931472, %v1251_v40  ;;  %v878_v33 = vand.u32 2147483647, %v1827_v61 }
 0x198   :  { %v962_v10 = vadd.f32 %v961_v20, %v960_v63  ;;  %v769_v19 = vadd.f32 %v763_v2, %v745_v41  ;;  %v775_v18 = vmul.f32 0.25, %v1104_v29  ;;  %v877_v21 = vmul.f32 %v1827_v61, %v876_v39 }
 0x199   :  { %v958_v34 = vrot.slane %v957_v60, 1  ;;  %v748_v44 = vmul.f32 %v1107_v5, %v742_v35  ;;  %v766_v47 = vmul.f32 %v760_v56, %v754_v16  ;;  %v784_v37 = vmul.f32 0.75, %v760_v56 }
 0x19a   :  { %v963_v52 = vrot.slane %v962_v10, 2  ;;  %v787_v51 = vadd.f32 %v781_v32, %v775_v18  ;;  %v793_v49 = vsub.f32 1.0, %v769_v19  ;;  %v820_v1 = vmul.f32 %v1107_v5, %v1707_v45 }
 0x19b   :  { %v823_v24 = vsub.f32 %v811_v0, %v817_v53  ;;  %v772_v54 = vadd.f32 %v766_v47, %v748_v44  ;;  %v778_v62 = vmul.f32 0.25, %v1107_v5  ;;  %vm1951_vm5 = vcmp.lt.f32.partialorder %v878_v33, 0.0004427343 }
 0x19c   :  { %v964_v38 = vadd.f32 %v963_v52, %v962_v10  ;;  %v799_v61 = vmul.f32 %v793_v49, %v787_v51  ;;  %v853_v12 = vsel %vm1939_vm1, %v850_v58, %v847_v50  ;;  %v826_v28 = vsub.f32 %v814_v27, %v820_v1 }
 0x19d   :  { %v790_v31 = vadd.f32 %v784_v37, %v778_v62  ;;  %v796_v13 = vsub.f32 1.0, %v772_v54  ;;  %v959_v46 = vadd.f32 %v958_v34, %v957_v60  ;;  %v880_v42 = vsel %vm1951_vm5, %v877_v21, %v874_v30 }
 0x19e   :  { %v965_v6 = vrot.slane %v964_v38, 1  ;;  %v805_v45 = vmul.f32 %v799_v61, %v793_v49  ;;  %v883_v0 = vadd.f32 %v853_v12, %v823_v24  ;;  %v886_v43 = vadd.f32 %v880_v42, %v826_v28 }
 0x19f   :  { %v802_v3 = vmul.f32 %v796_v13, %v790_v31  ;;  %vm586_vm6 = vcmp.gt.f32.partialorder %v1923_v8, -0.5  ;;  %vm589_vm7 = vcmp.gt.f32.partialorder %v1932_v36, -0.5 }
 0x1a0   :  { %v966_v23 = vadd.f32 %v965_v6, %v964_v38  ;;  %v889_v17 = vmul.f32 %v883_v0, %v805_v45 }
 0x1a1   :  { %v808_v4 = vmul.f32 %v802_v3, %v796_v13 }
 0x1a2   :  { %v977_v59 = vcombine.low %v959_v46, %v966_v23  ;;  %v895_v50 = vsel %vm586_vm6, %v889_v17, 0.0 }
 0x1a3   :  { %v892_v11 = vmul.f32 %v886_v43, %v808_v4 }
 0x1a4   :  { %v984_v39 = vrot.slane %v977_v59, %v1792_v7 }
 0x1a5   :  { %v898_v25 = vsel %vm589_vm7, %v892_v11, 0.0 }
 0x1a6   :  { %v967_v58 = vadd.f32 %v898_v25, %v895_v50 }
 0x1a8   :  { %v968_v48 = vrot.slane %v967_v58, 4 }
 0x1aa   :  { %v969_v22 = vadd.f32 %v968_v48, %v967_v58 }
 0x1ac   :  { %v970_v35 = vrot.slane %v969_v22, 2 }
 0x1ae   :  { %v971_v26 = vadd.f32 %v970_v35, %v969_v22 }
 0x1b0   :  { %v972_v15 = vrot.slane %v971_v26, 1 }
 0x1b2   :  { %v973_v29 = vadd.f32 %v972_v15, %v971_v26 }
 0x1b4   :  { %v991_v40 = vrot.slane %v973_v29, %v1792_v7 }
 0x1b6   :  { %v992_v63 = vcombine.low %v984_v39, %v991_v40 }
 0x1b8   :  { %v999_v8 = vrot.slane %v992_v63, %v1792_v7 }
 0x1ba   :  { %v1001_v36 = vadd.f32 %v999_v8, %v952_v55 }
 0x1bc   :  { %1004 = vst.msk [vmem:[#allocation16] sm:$0x7] %vm1663_vm4, %v1001_v36 }
 0x1bd   :  { %1439 = shalt.err (!%p1436_p12)
}
 0x1be   :  { %s1440_s25 = scalar_lea.hbm %s1987_s9, 48 }
 0x1bf   :  { %p1441_p13 = scmp.ne.s32.totalorder %s1987_s9, %s1440_s25  ;;  %p1444_p0 = scmp.lt.u32.totalorder %s1440_s25, %s1987_s9 }
 0x1c1   :  { %p1446_p1 = pnand %p1444_p0, %p1441_p13 }
 0x1c3   :  { %1449 = shalt.err (!%p1446_p1)
}
 0x1c4   :  { %1034 = dma.vmem_to_hbm [thread:$0]  %s1032_s10, 48, %s1987_s9, [#allocation15]  }
 0x1c5   :  { %1458 = dma.done.wait [#allocation4], 32  }
 0x1c6   :  { %1459 = vsyncadd [#allocation4], 4294967264 }
 0x1c7   :  { %1460 = dma.done.wait [#allocation15], 64  }
 0x1c8   :  { %1461 = vsyncadd [#allocation15], 4294967232 }
 0x1c9   :  { %1044 = vsyncpa [#allocation3], 1 }
 0x1ca   :  { %1045 = vsyncpa [#allocation6], 1 }
 0x1cb   :  { %1046 = vsyncpa [#allocation9], 1 }
 0x1cc   :  { %1047 = vsyncpa [#allocation12], 1 }
 0x1cd   :  { %1048 = vsyncpa [#allocation4], 1 }
 0x1ce   :  { %1049 = vsyncpa [#allocation15], 1 }

</bundles_post_ra>
